<compile_context>
chip_gen: v5e
topology: v5e:2x2
jax: 0.10.0
libtpu: 0.0.40
codegen_flags: <defaults>
</compile_context>

<pallas_src>
import math
import functools

import jax
import jax.numpy as jnp
from jax import lax
from jax.experimental import pallas as pl
from jax.experimental.pallas import tpu as pltpu


_LANE = 128
# 32 MiB scoped VMEM: the v6e/v7x default (raises v5e's 16 MiB) and well below
# v7x's 64 MiB physical VMEM.
_VMEM_LIMIT = 32 * 1024 * 1024
_PIPE_BUDGET = 24 * 1024 * 1024   # working-set budget (headroom for Mosaic scratch)


# ----------------------------------------------------------------------------
# helpers
# ----------------------------------------------------------------------------
def _round_up(x, m):
    return (x + m - 1) // m * m


def _compiler_params():
    # Row axis is embarrassingly parallel -> Mosaic may shard grid steps across
    # the 2 TensorCores on v7x (no effect on single-TC v5e/v6e).
    return pltpu.CompilerParams(dimension_semantics=("parallel",),
                                vmem_limit_bytes=_VMEM_LIMIT)


def _pick_row_tile(n_rows, per_row_bytes, const_bytes, *,
                   budget_bytes=_PIPE_BUDGET, preferred=1024):
    """Row tile for these HBM-bound row-wise kernels.

    Counts only real VMEM blocks (x2 for double-buffering) plus the resident
    weights; vreg temporaries are excluded.  Tiles are multiples of 256 when
    possible and the tile is capped so the grid keeps >= 2 steps (v7x
    megacore).  n <= 128 degenerates to a single full-extent block.
    """
    n = max(int(n_rows), 1)
    if n <= _LANE:
        return n
    cap = _round_up(pl.cdiv(n, 2), _LANE)          # keep >= 2 grid steps
    tile = min(preferred, cap)
    while tile > _LANE and 2 * tile * per_row_bytes + 2 * const_bytes > budget_bytes:
        tile -= _LANE
    if tile >= 256:
        tile = (tile // 256) * 256                 # full-width MXU passes
    return max(tile, _LANE)


def _resolve_tile(n, per_row_bytes, const_bytes, row_tile):
    n = max(int(n), 1)
    if n <= _LANE:
        return n
    if row_tile is not None:
        return max(_LANE, _round_up(int(row_tile), _LANE))
    return _pick_row_tile(n, per_row_bytes, const_bytes)


# ----------------------------------------------------------------------------
# kernel bodies
# ----------------------------------------------------------------------------
def _matcher_math(tx, ty, *, inv_temp, inv_sqrt_hd, use_norm):
    # TODO(synk): when the same ty feeds many relation types / negative samples,
    # precompute ||ty||^2 once and pass it as an extra (rows, 1) input.
    dot = jnp.sum(tx * ty, axis=-1, keepdims=True)
    if use_norm:
        nx2 = jnp.sum(tx * tx, axis=-1, keepdims=True)
        nt2 = jnp.sum(ty * ty, axis=-1, keepdims=True)
        # torch.nn.CosineSimilarity clamps EACH norm at eps=1e-8; clamp the
        # squared norms at eps**2 and fold both sqrts into a single EUP rsqrt.
        inv = lax.rsqrt(jnp.maximum(nx2, jnp.float32(1e-16)) *
                        jnp.maximum(nt2, jnp.float32(1e-16)))
        return dot * inv * jnp.float32(inv_temp)
    return dot * jnp.float32(inv_sqrt_hd)


def _matcher_kernel(x_ref, ty_ref, w_ref, b_ref, out_ref, *,
                    inv_temp, inv_sqrt_hd, use_norm):
    # tx = x @ W^T + b (W stored pre-transposed as (n_hid, n_out)).  Operands
    # are read at their HBM dtype; bf16 cast happens only at the MXU boundary
    # (VPU cast hides under DMA/MXU).  Accumulation and norm math stay f32.
    tx = jnp.dot(x_ref[...].astype(jnp.bfloat16), w_ref[...],
                 preferred_element_type=jnp.float32) + b_ref[...]
    ty = ty_ref[...].astype(jnp.float32)
    score = _matcher_math(tx, ty, inv_temp=inv_temp,
                          inv_sqrt_hd=inv_sqrt_hd, use_norm=use_norm)
    # Lane-dense store: one small XLU transpose of the (tile, 1) reduction
    # result per step instead of masked (tile, 1) partial stores.
    out_ref[...] = jnp.transpose(score)


def _gnn_kernel(feat_ref, w_ref, b_ref, out_ref):
    h = jnp.dot(feat_ref[...].astype(jnp.bfloat16), w_ref[...],
                preferred_element_type=jnp.float32) + b_ref[...]
    out_ref[...] = jnp.maximum(h, 0.0).astype(out_ref.dtype)


def _fused_kernel(feat_ref, ty_ref, gw_ref, gb_ref, mw_ref, mb_ref,
                  emb_ref, score_ref, *, inv_temp, inv_sqrt_hd, use_norm):
    # GNN stand-in (Linear+ReLU) and Matcher fused per row tile: h never
    # round-trips through HBM between the two stages; the emb writeback is
    # bf16 (it is re-cast to bf16 for the matcher matmul anyway).
    h = jnp.dot(feat_ref[...].astype(jnp.bfloat16), gw_ref[...],
                preferred_element_type=jnp.float32) + gb_ref[...]
    h = jnp.maximum(h, 0.0)
    hb = h.astype(jnp.bfloat16)
    emb_ref[...] = hb.astype(emb_ref.dtype)
    tx = jnp.dot(hb, mw_ref[...], preferred_element_type=jnp.float32) + mb_ref[...]
    ty = ty_ref[...].astype(jnp.float32)
    score = _matcher_math(tx, ty, inv_temp=inv_temp,
                          inv_sqrt_hd=inv_sqrt_hd, use_norm=use_norm)
    score_ref[...] = jnp.transpose(score)


# ----------------------------------------------------------------------------
# wrappers
# ----------------------------------------------------------------------------
# TODO(synk): for n_hid >= 2-4K add a K-axis to the grid with a f32 VMEM
# accumulator (pl.when init/finalize) and keep the weights single-buffered
# (pl.Buffered(1) / scratch-resident) so the double-buffered working set still
# fits v7x's 64 MiB VMEM.
def matcher_forward(x, ty, w, b, *, temperature=0.1, use_norm=True, row_tile=None):
    """Pallas implementation of Matcher.forward (dropout = identity, eval)."""
    n, n_hid = x.shape
    n_out = w.shape[1]
    wb = w.astype(jnp.bfloat16)                  # tiny one-time cast, VMEM-resident
    b2 = b.reshape(1, n_out).astype(jnp.float32)

    per_row = x.dtype.itemsize * n_hid + ty.dtype.itemsize * n_out + 4
    const = 2 * n_hid * n_out + 4 * n_out
    tile = _resolve_tile(n, per_row, const, row_tile)

    kern = functools.partial(_matcher_kernel,
                             inv_temp=1.0 / temperature,
                             inv_sqrt_hd=1.0 / math.sqrt(n_out),
                             use_norm=use_norm)
    out = pl.pallas_call(
        kern,
        out_shape=jax.ShapeDtypeStruct((1, n), jnp.float32),
        grid_spec=pltpu.PrefetchScalarGridSpec(
            num_scalar_prefetch=0,
            grid=(pl.cdiv(n, tile),),
            in_specs=[
                pl.BlockSpec((tile, n_hid), lambda i: (i, 0)),
                pl.BlockSpec((tile, n_out), lambda i: (i, 0)),
                pl.BlockSpec((n_hid, n_out), lambda i: (0, 0)),   # VMEM-resident
                pl.BlockSpec((1, n_out), lambda i: (0, 0)),
            ],
            out_specs=pl.BlockSpec((1, tile), lambda i: (0, i)),  # lane-dense
        ),
        compiler_params=_compiler_params(),
    )(x, ty, wb, b2)
    return out[0]


# Stand-in GNN encoder (the real `gnn` is an injected dependency of GPT_GNN,
# e.g. HGT; GPT_GNN.forward simply calls it).
# TODO(synk): the real heterogeneous-graph conv (HGTConv) with edge_time /
# edge_type attention is an external module; here the injected gnn is a
# node-wise Linear+ReLU projection (in_dim -> n_hid).
def gnn_forward(node_feature, w, b, *, row_tile=None, out_dtype=jnp.bfloat16):
    n, in_dim = node_feature.shape
    n_hid = w.shape[1]
    wb = w.astype(jnp.bfloat16)
    b2 = b.reshape(1, n_hid).astype(jnp.float32)

    per_row = (node_feature.dtype.itemsize * in_dim
               + jnp.dtype(out_dtype).itemsize * n_hid)
    const = 2 * in_dim * n_hid + 4 * n_hid
    tile = _resolve_tile(n, per_row, const, row_tile)

    return pl.pallas_call(
        _gnn_kernel,
        out_shape=jax.ShapeDtypeStruct((n, n_hid), out_dtype),
        grid_spec=pltpu.PrefetchScalarGridSpec(
            num_scalar_prefetch=0,
            grid=(pl.cdiv(n, tile),),
            in_specs=[
                pl.BlockSpec((tile, in_dim), lambda i: (i, 0)),
                pl.BlockSpec((in_dim, n_hid), lambda i: (0, 0)),
                pl.BlockSpec((1, n_hid), lambda i: (0, 0)),
            ],
            out_specs=pl.BlockSpec((tile, n_hid), lambda i: (i, 0)),
        ),
        compiler_params=_compiler_params(),
    )(node_feature, wb, b2)


def fused_gnn_matcher(node_feature, ty, gnn_w, gnn_b, match_w, match_b, *,
                      temperature=0.1, use_norm=True, row_tile=None):
    """One pallas_call per row tile: h = relu(x@Wg+bg) stays in VMEM and feeds
    the Matcher directly (no HBM round trip for the node embeddings)."""
    n, in_dim = node_feature.shape
    n_hid = gnn_w.shape[1]
    n_out = match_w.shape[1]

    gwb = gnn_w.astype(jnp.bfloat16)
    gb2 = gnn_b.reshape(1, n_hid).astype(jnp.float32)
    mwb = match_w.astype(jnp.bfloat16)
    mb2 = match_b.reshape(1, n_out).astype(jnp.float32)

    per_row = (node_feature.dtype.itemsize * in_dim
               + ty.dtype.itemsize * n_out + 2 * n_hid + 4)
    const = 2 * (in_dim * n_hid + n_hid * n_out) + 4 * (n_hid + n_out)
    tile = _resolve_tile(n, per_row, const, row_tile)

    kern = functools.partial(_fused_kernel,
                             inv_temp=1.0 / temperature,
                             inv_sqrt_hd=1.0 / math.sqrt(n_out),
                             use_norm=use_norm)
    emb, score = pl.pallas_call(
        kern,
        out_shape=(jax.ShapeDtypeStruct((n, n_hid), jnp.bfloat16),
                   jax.ShapeDtypeStruct((1, n), jnp.float32)),
        grid_spec=pltpu.PrefetchScalarGridSpec(
            num_scalar_prefetch=0,
            grid=(pl.cdiv(n, tile),),
            in_specs=[
                pl.BlockSpec((tile, in_dim), lambda i: (i, 0)),
                pl.BlockSpec((tile, n_out), lambda i: (i, 0)),
                pl.BlockSpec((in_dim, n_hid), lambda i: (0, 0)),
                pl.BlockSpec((1, n_hid), lambda i: (0, 0)),
                pl.BlockSpec((n_hid, n_out), lambda i: (0, 0)),
                pl.BlockSpec((1, n_out), lambda i: (0, 0)),
            ],
            out_specs=[pl.BlockSpec((tile, n_hid), lambda i: (i, 0)),
                       pl.BlockSpec((1, tile), lambda i: (0, i))],
        ),
        compiler_params=_compiler_params(),
    )(node_feature, ty, gwb, gb2, mwb, mb2)
    return emb, score[0]


# ----------------------------------------------------------------------------
# JAX-side GPT_GNN module (parameter container + glue).
# ----------------------------------------------------------------------------
def _linear_init(key, fan_in, shape):
    # torch.nn.Linear default init: U(-1/sqrt(fan_in), 1/sqrt(fan_in))
    bound = 1.0 / math.sqrt(fan_in)
    return jax.random.uniform(key, shape, jnp.float32, -bound, bound)


class GPT_GNN:
    def __init__(self, gnn_params, rem_edge_list, in_dim, n_hid,
                 neg_samp_num, neg_queue_size=0, key=None):
        self.in_dim = in_dim
        self.n_hid = n_hid
        self.neg_samp_num = neg_samp_num
        self.neg_queue_size = neg_queue_size
        self.gnn_params = gnn_params  # injected gnn (stand-in: linear weights)
        self.link_dec_dict = {}
        key = jax.random.PRNGKey(0) if key is None else key
        for source_type in rem_edge_list:
            self.link_dec_dict[source_type] = {}
            for relation_type in rem_edge_list[source_type]:
                key, kw, kb = jax.random.split(key, 3)
                # Matcher(gnn.n_hid, gnn.n_hid): Linear(n_hid, n_hid);
                # sqrt_hd = sqrt(n_out) exactly as in the original Matcher.
                w = _linear_init(kw, n_hid, (n_hid, n_hid))
                b = _linear_init(kb, n_hid, (n_hid,))
                self.link_dec_dict[source_type][relation_type] = (w, b)
        key, ke = jax.random.split(key)
        self.init_emb = jax.random.normal(ke, (in_dim,), jnp.float32)

    def forward(self, node_feature, node_type, edge_time, edge_index, edge_type):
        # Mirrors GPT_GNN.forward: delegate to the gnn encoder.
        # (node_type / edge_time / edge_index / edge_type are consumed by the
        #  real HGT gnn; the stand-in node-wise encoder ignores them.)
        del node_type, edge_time, edge_index, edge_type
        w, b = self.gnn_params
        return gnn_forward(node_feature, w, b)

    def match(self, source_type, relation_type, x, ty, use_norm=True):
        w, b = self.link_dec_dict[source_type][relation_type]
        return matcher_forward(x, ty, w, b, temperature=0.1, use_norm=use_norm)

    def forward_and_match(self, source_type, relation_type, node_feature,
                          node_type, edge_time, edge_index, edge_type, ty,
                          use_norm=True):
        # Fused encoder + link decoder (single HBM pass over the node tiles).
        del node_type, edge_time, edge_index, edge_type
        gw, gb = self.gnn_params
        mw, mb = self.link_dec_dict[source_type][relation_type]
        return fused_gnn_matcher(node_feature, ty, gw, gb, mw, mb,
                                 temperature=0.1, use_norm=use_norm)


# ----------------------------------------------------------------------------
if __name__ == "__main__":
    key = jax.random.PRNGKey(0)
    # n_nodes deliberately not a multiple of the row tile (exercises the
    # ragged last block + a 2-step grid); feature dims are 128-lane aligned.
    n_nodes, in_dim, n_hid = 500, 128, 128

    k_feat, k_gw, k_gb, k_ty, k_model = jax.random.split(key, 5)
    node_feature = jax.random.normal(k_feat, (n_nodes, in_dim), jnp.float32)
    node_type = jnp.zeros((n_nodes,), jnp.int32)
    edge_index = jnp.stack([jnp.arange(n_nodes, dtype=jnp.int32),
                            (jnp.arange(n_nodes, dtype=jnp.int32) + 1) % n_nodes])
    edge_time = jnp.zeros((n_nodes,), jnp.int32)
    edge_type = jnp.zeros((n_nodes,), jnp.int32)

    gnn_w = _linear_init(k_gw, in_dim, (in_dim, n_hid))
    gnn_b = _linear_init(k_gb, in_dim, (n_hid,))

    rem_edge_list = {"paper": {"PP_cite": None}}
    model = GPT_GNN((gnn_w, gnn_b), rem_edge_list, in_dim, n_hid,
                    neg_samp_num=4, key=k_model)

    ty = jax.random.normal(k_ty, (n_nodes, n_hid), jnp.float32)

    # 1) GPT_GNN.forward: node embeddings from the (stand-in) gnn encoder.
    node_emb = jax.block_until_ready(
        model.forward(node_feature, node_type, edge_time, edge_index, edge_type))

    # 2) Matcher forward (the link decoder), both branches.
    res_norm = jax.block_until_ready(
        model.match("paper", "PP_cite", node_emb, ty, use_norm=True))
    res_dot = jax.block_until_ready(
        model.match("paper", "PP_cite", node_emb, ty, use_norm=False))

    # 3) Fused encoder -> decoder path (single pallas_call).
    emb_f, score_f = model.forward_and_match(
        "paper", "PP_cite", node_feature, node_type, edge_time, edge_index,
        edge_type, ty, use_norm=True)
    emb_f = jax.block_until_ready(emb_f)
    score_f = jax.block_until_ready(score_f)

    # Silent correctness check vs a plain-JAX reference mirroring the kernels'
    # bf16-operand / f32-accumulate arithmetic.
    def bf(v):
        return v.astype(jnp.bfloat16).astype(jnp.float32)

    w, b = model.link_dec_dict["paper"]["PP_cite"]
    ref_emb = jnp.maximum(bf(node_feature) @ bf(gnn_w) + gnn_b, 0.0
                          ).astype(jnp.bfloat16)
    emb32 = node_emb.astype(jnp.float32)
    tx = emb32 @ bf(w) + b
    dot = jnp.sum(tx * ty, -1)
    nx2 = jnp.sum(tx * tx, -1)
    nt2 = jnp.sum(ty * ty, -1)
    ref_norm = dot * lax.rsqrt(jnp.maximum(nx2, 1e-16) *
                               jnp.maximum(nt2, 1e-16)) / 0.1
    ref_dot = dot / math.sqrt(n_hid)

    assert jnp.allclose(node_emb.astype(jnp.float32), ref_emb.astype(jnp.float32),
                        atol=1e-2, rtol=1e-2)
    assert jnp.allclose(res_norm, ref_norm, atol=2e-2, rtol=2e-2)
    assert jnp.allclose(res_dot, ref_dot, atol=2e-2, rtol=2e-2)
    assert jnp.allclose(emb_f.astype(jnp.float32), node_emb.astype(jnp.float32),
                        atol=1e-2, rtol=1e-2)
    assert jnp.allclose(score_f, res_norm, atol=2e-2, rtol=2e-2)

    print("KERNEL_OK")
</pallas_src>

<mosaic_0001>
module attributes {stable_mosaic.version = 11 : i64} {
  func.func @_gnn_kernel(%arg0: i32, %arg1: memref<256x128xf32, #tpu.memory_space<vmem>>, %arg2: memref<128x128xbf16, #tpu.memory_space<vmem>>, %arg3: memref<1x128xf32, #tpu.memory_space<vmem>>, %arg4: memref<256x128xbf16, #tpu.memory_space<vmem>>) attributes {dimension_semantics = [#tpu.dimension_semantics<parallel>], iteration_bounds = array<i64: 2>, scalar_prefetch = 0 : i64, scratch_operands = 0 : i64, tpu.core_type = #tpu.core_type<tc>, window_params = [{transform_indices = @transform_0, window_bounds = array<i64: 256, 128>}, {pipeline_mode = #tpu.pipeline_mode<synchronous>, transform_indices = @transform_1, window_bounds = array<i64: 128, 128>}, {pipeline_mode = #tpu.pipeline_mode<synchronous>, transform_indices = @transform_2, window_bounds = array<i64: 1, 128>}, {transform_indices = @transform_3, window_bounds = array<i64: 256, 128>}]} {
    %c0 = arith.constant 0 : index
    %c0_0 = arith.constant 0 : index
    %0 = vector.load %arg1[%c0, %c0_0] : memref<256x128xf32, #tpu.memory_space<vmem>>, vector<256x128xf32>
    %1 = arith.truncf %0 : vector<256x128xf32> to vector<256x128xbf16>
    %c0_1 = arith.constant 0 : index
    %c0_2 = arith.constant 0 : index
    %2 = vector.load %arg2[%c0_1, %c0_2] : memref<128x128xbf16, #tpu.memory_space<vmem>>, vector<128x128xbf16>
    %cst = arith.constant dense<0.000000e+00> : vector<256x128xf32>
    %3 = tpu.matmul %1, %2, %cst {dimension_numbers = #tpu.dot_dimension_numbers<[1], [0], [0], [1], [0, 0, 1, 1], [], []>} : vector<256x128xbf16>, vector<128x128xbf16>, vector<256x128xf32> -> vector<256x128xf32>
    %c0_3 = arith.constant 0 : index
    %c0_4 = arith.constant 0 : index
    %4 = vector.load %arg3[%c0_3, %c0_4] : memref<1x128xf32, #tpu.memory_space<vmem>>, vector<1x128xf32>
    %5 = vector.broadcast %4 : vector<1x128xf32> to vector<256x128xf32>
    %6 = arith.addf %3, %5 : vector<256x128xf32>
    %cst_5 = arith.constant 0.000000e+00 : f32
    %7 = vector.broadcast %cst_5 : f32 to vector<256x128xf32>
    %8 = arith.maximumf %6, %7 : vector<256x128xf32>
    %9 = arith.truncf %8 : vector<256x128xf32> to vector<256x128xbf16>
    %c0_6 = arith.constant 0 : index
    %c0_7 = arith.constant 0 : index
    %10 = vector.load %arg4[%c0_6, %c0_7] : memref<256x128xbf16, #tpu.memory_space<vmem>>, vector<256x128xbf16>
    tpu.vector_store %arg4[%c0_6, %c0_7], %9 {strides = array<i32>} : memref<256x128xbf16, #tpu.memory_space<vmem>>, vector<256x128xbf16>,
    return
  }
  func.func @transform_0(%arg0: i32) -> (i32, i32) {
    %c0_i32 = arith.constant 0 : i32
    %c0_i32_0 = arith.constant 0 : i32
    return %arg0, %c0_i32 : i32, i32
  }
  func.func @transform_1(%arg0: i32) -> (i32, i32) {
    %c0_i32 = arith.constant 0 : i32
    %c0_i32_0 = arith.constant 0 : i32
    %c0_i32_1 = arith.constant 0 : i32
    return %c0_i32, %c0_i32_0 : i32, i32
  }
  func.func @transform_2(%arg0: i32) -> (i32, i32) {
    %c0_i32 = arith.constant 0 : i32
    %c0_i32_0 = arith.constant 0 : i32
    %c0_i32_1 = arith.constant 0 : i32
    return %c0_i32, %c0_i32_0 : i32, i32
  }
  func.func @transform_3(%arg0: i32) -> (i32, i32) {
    %c0_i32 = arith.constant 0 : i32
    %c0_i32_0 = arith.constant 0 : i32
    return %arg0, %c0_i32 : i32, i32
  }
}

</mosaic_0001>

<bundles_post_ra>
// kernel: tpu_custom_call.1
= control target key start
LH: loop header
LB: loop body
LE: loop exit
PB: predicated region body
PF: predicated region fallthrough
CT: control target
= control target key end

     0   :  { %8 = vsyncpa [#allocation3], 0  ;;  %s1344_s0 = inlined_call_operand.hbm [shape: f32[500,128], index: 0, kind: input, shape index: {}]   ;;  %s1345_s1 = inlined_call_operand.hbm [shape: bf16[128,128], index: 1, kind: input, shape index: {}]   ;;  %s1346_s2 = inlined_call_operand.vmem [shape: f32[1,128], index: 2, kind: input, shape index: {}]   ;;  %s1347_s3 = inlined_call_operand.hbm [shape: bf16[500,128], index: 3, kind: output, shape index: {}]  }
   0x1   :  { %10 = vsyncpa [#allocation3 + $0x1], 0 }
   0x2   :  { %11 = vsyncpa [#allocation6], 0 }
   0x3   :  { %12 = vsyncpa [#allocation4], 0 }
   0x4   :  { %14 = vsyncpa [#allocation4 + $0x1], 0  ;;  %s1055_s12 = smov 0   ;;  %s1057_s13 = smov 0  }
   0x5   :  { %s1059_s14 = smov 0   ;;  %s1061_s15 = smov 0  }
   0x6 LB: > { %s1076_s16 = sadd.s32 4294967295, %s1024_s15   ;;  %s632_s17 = sadd.s32 4294967294, %s1024_s15   ;;  %s1024_s15 = sphi %s1061_s15, %s1364_s15   ;;  %s1020_s14 = sphi %s1059_s14, %s1363_s14   ;;  %s1016_s13 = sphi %s1057_s13, %s1362_s13   ;;  %s1012_s12 = sphi %s1055_s12, %s1361_s12  }
   0x7   : > { %s1080_s18 = sadd.s32 1, %s1024_s15   ;;  %s27_s19 = sadd.s32 1, %s1020_s14 }
   0x8   : > { %s24_s20 = ssub.s32 %s1024_s15, %s1080_s18  ;;  %p34_p0 = scmp.ne.s32.totalorder %s1020_s14, %s1016_s13 }
   0x9   : > { %p25_p1 = scmp.eq.s32.totalorder %s24_s20, 0  ;;  %p35_p2 = scmp.eq.s32.totalorder %s1024_s15, 0 }
   0xa   : > { %p40_p3 = scmp.ne.s32.totalorder %s1016_s13, %s1012_s12  ;;  %p1349_p4 = scmp.eq.s32.totalorder %s1076_s16, 0 }
   0xb   : > { %s1092_s21 = scalar_select %p25_p1, %s1020_s14, %s27_s19  }
   0xc   : > { %p1094_p5 = por %p35_p2, %p34_p0  ;;  %p1100_p6 = por %p1349_p4, %p40_p3 }
   0xd   : > { %p106_p7 = scmp.eq.s32.totalorder %s1076_s16, 1  ;;  %p112_p8 = scmp.eq.s32.totalorder %s632_s17, 1 }
   0xe   : > { %p633_p9 = scmp.ge.s32.totalorder %s1024_s15, 1  ;;  %p119_p10 = scmp.lt.s32.totalorder %s1024_s15, 3 }
   0xf   : > { %p1107_p11 = por %p106_p7, %p34_p0  ;;  %p1111_p12 = por %p112_p8, %p40_p3 }
  0x10   : > { %p1115_p13 = pnand %p633_p9, %p119_p10  ;;  %s130_s29 = sshll.u32 %s1345_s1, 4  ;;  %s131_s29 = int_to_ptr.hbm [resolvable:$true] %s130_s29 }
  0x11   : > { %s1353_s25 = scalar_select %p1111_p12, 1, 0 }
  0x12   : > { %p823_p1 = pneg %p1115_p13  ;;  %s1026_s30 = smov [#allocation5]  }
  0x13   : > { %s132_s4 = sshll.u32 %s1026_s30, 4  ;;  %s1027_s5 = smov 64   ;;  %s133_s4 = int_to_ptr.vmem [resolvable:$true] %s132_s4 }
  0x14   : > { %p824_p0 = pnand %p823_p1, %p1349_p4  ;;  %s1028_s6 = smov 4  }
  0x15   : > { %p1348_p2 = scmp.ge.s32.totalorder %s1024_s15, 2 }
  0x16   : > { %826 = dma.hbm_to_vmem [thread:$0]  (!%p824_p0), %s131_s29, 1024, %s133_s4, [#allocation6], %s1027_s5, %s1027_s5, %s1028_s6  }
  0x17   : > { %145 = sbr.rel (%p1348_p2) target bundleno = 64 (0x40), region = 24 }
  0x1c   : > { %148 = sbr.rel (!%p1094_p5) target bundleno = 64 (0x40), region = 28  ;;  %s149_s7 = sand.u32 (%p1094_p5), 1, %s1020_s14  }
  0x1d   : > { %s637_s8 = sshll.u32 (%p1094_p5), %s1024_s15, 5  ;;  %s636_s9 = sshll.u32 (%p1094_p5), %s149_s7, 8 }
  0x1e   : > { %s155_s10 = ssub.s32 (%p1094_p5), 63, %s637_s8  ;;  %s1136_s20 = scalar_lea.sflag (%p1094_p5), [#allocation3], %s149_s7 }
  0x1f   : > { %p156_p3 = scmp.lt.s32.totalorder (%p1094_p5), %s155_s10, 32  ;;  %s153_s27 = scalar_lea.vmem (%p1094_p5), [#allocation2], %s636_s9 }
  0x21   : > { %s1366_s10 = smov (!%p156_p3, %s155_s10), 32 }
  0x22   : > { %s638_s11 = sshll.u32 %s1366_s10, 3 }
  0x23   : > { %s159_s17 = ssub.s32 256, %s638_s11 }
  0x24   : > { %s160_s19 = sshll.u32 %s159_s17, 4 }
  0x25   : > { %161 = vsyncadd %s1136_s20, %s160_s19  ;;  %p1139_p5 = scmp.ne.s32.totalorder %s638_s11, 0  ;;  %s688_s28 = sshll.u32 %s1024_s15, 8 }
  0x26   : > { %s164_s4 = scalar_lea.hbm %s1344_s0, %s688_s28  ;;  %s1147_s5 = sshll.u32 %s153_s27, 4  ;;  %s169_s5 = int_to_ptr.vmem [resolvable:$true] %s1147_s5 }
  0x27   : > { %s166_s6 = sshll.u32 %s164_s4, 4  ;;  %s642_s7 = sshll.u32 %s1366_s10, 7  ;;  %s1150_s6 = int_to_ptr.hbm [resolvable:$true] %s166_s6 }
  0x28   : > { %s904_s8 = sshra.s32 %s1150_s6, 4  ;;  %s906_s9 = sshrl.u32 %s642_s7, 4  ;;  %s905_s8 = int_to_ptr.hbm [resolvable:$true] %s904_s8 }
  0x29   : > { %s911_s11 = scalar_lea.hbm %s905_s8, %s906_s9  ;;  %s915_s27 = scalar_lea.hbm %s1344_s0, 504 }
  0x2a   : > { %p912_p7 = scmp.ne.s32.totalorder %s905_s8, %s911_s11  ;;  %p916_p10 = scmp.lt.s32.totalorder %s905_s8, %s1344_s0 }
  0x2b   : > { %p917_p1 = scmp.lt.s32.totalorder %s915_s27, %s911_s11 }
  0x2c   : > { %p913_p8 = pnand %p912_p7, %p1139_p5 }
  0x2d   : > { %p918_p0 = por %p917_p1, %p916_p10 }
  0x2e   : > { %p914_p9 = pneg %p913_p8 }
  0x30   : > { %p919_p3 = pnand %p918_p0, %p914_p9 }
  0x32   : > { %922 = shalt.err (!%p919_p3)
}
  0x33   : > { %s923_s30 = sshra.s32 %s169_s5, 4  ;;  %s1029_s17 = smov [#allocation2]   ;;  %s924_s30 = int_to_ptr.vmem [resolvable:$true] %s923_s30 }
  0x34   : > { %s930_s4 = scalar_lea.vmem %s924_s30, %s906_s9  ;;  %s934_s19 = scalar_lea.vmem %s1029_s17, 512 }
  0x35   : > { %p931_p7 = scmp.ne.s32.totalorder %s924_s30, %s930_s4  ;;  %p936_p4 = scmp.lt.s32.totalorder %s934_s19, %s930_s4 }
  0x37   : > { %p932_p8 = pnand %p931_p7, %p1139_p5 }
  0x39   : > { %p933_p2 = pneg %p932_p8 }
  0x3b   : > { %p938_p12 = pnand %p936_p4, %p933_p2 }
  0x3d   : > { %941 = shalt.err (!%p938_p12)
}
  0x3e   : > { %s1030_s8 = smov 128   ;;  %s1031_s11 = smov 8  }
  0x3f   : > { %174 = dma.hbm_to_vmem [thread:$0]  (%p1139_p5), %s1150_s6, %s642_s7, %s169_s5, %s1136_s20, %s1030_s8, %s1030_s8, %s1031_s11  }
  0x40 PF: > { %180 = sbr.rel (%p1115_p13) target bundleno = 333 (0x14d), region = 32  ;;  %s1179_s9 = sand.u32 (!%p1115_p13), 1, %s1016_s13  }
  0x41   : > { %s644_s27 = sshll.u32 (!%p1115_p13), %s1179_s9, 8  ;;  %s183_s28 = scalar_lea.sflag (!%p1115_p13), [#allocation3], %s1179_s9 }
  0x42   : > { %s1183_s29 = scalar_lea.vmem (!%p1115_p13), [#allocation2], %s644_s27 }
  0x45   : > { %999 = dma.done.wait (%p1100_p6), %s183_s28, 4096  }
  0x46   : > { %1001 = vsyncadd (%p1100_p6), %s183_s28, 4294963200  ;;  %p1356_p4 = scmp.eq.s32.totalorder %s1076_s16, 0 }
  0x48   : > { %1003 = dma.done.wait (%p1356_p4), [#allocation6], 1024   ;;  %p1357_p12 = pmov %p1356_p4 }
  0x49   : > { %v696_v0 = vld [vmem:[#allocation5 + $0x38] sm:$0xff]  ;;  %v695_v1 = vld [vmem:[#allocation5 + $0x30] sm:$0xff]  ;;  %v694_v2 = vld [vmem:[#allocation5 + $0x28] sm:$0xff]  ;;  %s646_s10 = sshll.u32 %s1179_s9, 7  ;;  %s527_s22 = scalar_lea.sflag [#allocation4], %s1179_s9 }
  0x4a   : > { %1005 = vsyncadd (%p1357_p12), [#allocation6], 4294966272  ;;  %341 = vmatpush.bf16.msra.mxu0 %v696_v0  ;;  %793 = vmatpush.bf16.msra.mxu1 %v696_v0  ;;  %v693_v3 = vld [vmem:[#allocation5 + $0x20] sm:$0xff]  ;;  %v692_v4 = vld [vmem:[#allocation5 + $0x18] sm:$0xff]  ;;  %s1237_s20 = scalar_lea.vmem [#allocation7], %s646_s10  ;;  %s680_s5 = sshll.u32 (%p1107_p11), %s1076_s16, 5 }
  0x4b   : > { %794 = vmatpush.bf16.msra.mxu2 %v696_v0  ;;  %795 = vmatpush.bf16.msra.mxu3 %v696_v0  ;;  %v691_v5 = vld [vmem:[#allocation5 + $0x10] sm:$0xff]  ;;  %v690_v6 = vld [vmem:[#allocation5 + $0x8] sm:$0xff]  ;;  %v689_v7 = vld [vmem:[#allocation5] sm:$0xff]  ;;  %s535_s6 = ssub.s32 (%p1107_p11), 63, %s680_s5 }
  0x4c   : > { %v225_v8 = vld [vmem:[%s1183_s29] sm:$0xff]  ;;  %v226_v9 = vld [vmem:[%s1183_s29 + $0x8] sm:$0xff]  ;;  %v227_v20 = vld [vmem:[%s1183_s29 + $0x10] sm:$0xff]  ;;  %p536_p6 = scmp.lt.s32.totalorder (%p1107_p11), %s535_s6, 32 }
  0x4d   : > { %v233_v10 = vld [vmem:[%s1183_s29 + $0x40] sm:$0xff]  ;;  %v234_v11 = vld [vmem:[%s1183_s29 + $0x48] sm:$0xff]  ;;  %v257_v16 = vpack.c.bf16 %v226_v9, %v225_v8  ;;  %v228_v21 = vld [vmem:[%s1183_s29 + $0x18] sm:$0xff] }
  0x4e   : > { %342 = vmatpush.bf16.msra.mxu0 %v695_v1  ;;  %796 = vmatpush.bf16.msra.mxu1 %v695_v1  ;;  %v241_v12 = vld [vmem:[%s1183_s29 + $0x80] sm:$0xff]  ;;  %v242_v13 = vld [vmem:[%s1183_s29 + $0x88] sm:$0xff]  ;;  %v261_v17 = vpack.c.bf16 %v234_v11, %v233_v10  ;;  %v235_v22 = vld [vmem:[%s1183_s29 + $0x50] sm:$0xff]  ;;  %v258_v28 = vpack.c.bf16 %v228_v21, %v227_v20 }
  0x4f   : > { %797 = vmatpush.bf16.msra.mxu2 %v695_v1  ;;  %798 = vmatpush.bf16.msra.mxu3 %v695_v1  ;;  %v249_v14 = vld [vmem:[%s1183_s29 + $0xc0] sm:$0xff]  ;;  %v250_v15 = vld [vmem:[%s1183_s29 + $0xc8] sm:$0xff]  ;;  %v265_v18 = vpack.c.bf16 %v242_v13, %v241_v12  ;;  %v236_v23 = vld [vmem:[%s1183_s29 + $0x58] sm:$0xff] }
  0x50   : > { %v269_v19 = vpack.c.bf16 %v250_v15, %v249_v14  ;;  %v243_v24 = vld [vmem:[%s1183_s29 + $0x90] sm:$0xff]  ;;  %v244_v25 = vld [vmem:[%s1183_s29 + $0x98] sm:$0xff]  ;;  %v262_v29 = vpack.c.bf16 %v236_v23, %v235_v22  ;;  %v229_v32 = vld [vmem:[%s1183_s29 + $0x20] sm:$0xff] }
  0x51   : > { %v251_v26 = vld [vmem:[%s1183_s29 + $0xd0] sm:$0xff]  ;;  %v252_v27 = vld [vmem:[%s1183_s29 + $0xd8] sm:$0xff]  ;;  %v266_v30 = vpack.c.bf16 %v244_v25, %v243_v24  ;;  %v230_v33 = vld [vmem:[%s1183_s29 + $0x28] sm:$0xff] }
  0x52   : > { %343 = vmatpush.bf16.msra.mxu0 %v694_v2  ;;  %799 = vmatpush.bf16.msra.mxu1 %v694_v2  ;;  %v270_v31 = vpack.c.bf16 %v252_v27, %v251_v26  ;;  %v237_v34 = vld [vmem:[%s1183_s29 + $0x60] sm:$0xff]  ;;  %v238_v35 = vld [vmem:[%s1183_s29 + $0x68] sm:$0xff]  ;;  %v259_v40 = vpack.c.bf16 %v230_v33, %v229_v32  ;;  %v231_v44 = vld [vmem:[%s1183_s29 + $0x30] sm:$0xff] }
  0x53   : > { %800 = vmatpush.bf16.msra.mxu2 %v694_v2  ;;  %801 = vmatpush.bf16.msra.mxu3 %v694_v2  ;;  %v245_v36 = vld [vmem:[%s1183_s29 + $0xa0] sm:$0xff]  ;;  %v246_v37 = vld [vmem:[%s1183_s29 + $0xa8] sm:$0xff]  ;;  %v263_v41 = vpack.c.bf16 %v238_v35, %v237_v34  ;;  %v232_v45 = vld [vmem:[%s1183_s29 + $0x38] sm:$0xff] }
  0x54   : > { %v253_v38 = vld [vmem:[%s1183_s29 + $0xe0] sm:$0xff]  ;;  %v254_v39 = vld [vmem:[%s1183_s29 + $0xe8] sm:$0xff]  ;;  %v267_v42 = vpack.c.bf16 %v246_v37, %v245_v36  ;;  %v239_v46 = vld [vmem:[%s1183_s29 + $0x70] sm:$0xff]  ;;  %v260_v52 = vpack.c.bf16 %v232_v45, %v231_v44 }
  0x55   : > { %v271_v43 = vpack.c.bf16 %v254_v39, %v253_v38  ;;  %v240_v47 = vld [vmem:[%s1183_s29 + $0x78] sm:$0xff]  ;;  %v247_v48 = vld [vmem:[%s1183_s29 + $0xb0] sm:$0xff]  ;;  %v1228_v58 = vld [vmem:[%s1346_s2] ss:$0 sm:$0xff] }
  0x56   : > { %344 = vmatpush.bf16.msra.mxu0 %v693_v3  ;;  %802 = vmatpush.bf16.msra.mxu1 %v693_v3  ;;  %v248_v49 = vld [vmem:[%s1183_s29 + $0xb8] sm:$0xff]  ;;  %v255_v50 = vld [vmem:[%s1183_s29 + $0xf0] sm:$0xff]  ;;  %v264_v53 = vpack.c.bf16 %v240_v47, %v239_v46 }
  0x57   : > { %803 = vmatpush.bf16.msra.mxu2 %v693_v3  ;;  %804 = vmatpush.bf16.msra.mxu3 %v693_v3  ;;  %v256_v51 = vld [vmem:[%s1183_s29 + $0xf8] sm:$0xff]  ;;  %v268_v54 = vpack.c.bf16 %v248_v49, %v247_v48 }
  0x58   : > { %v272_v55 = vpack.c.bf16 %v256_v51, %v255_v50 }
  0x5a   : > { %345 = vmatpush.bf16.msra.mxu0 %v692_v4  ;;  %805 = vmatpush.bf16.msra.mxu1 %v692_v4 }
  0x5b   : > { %806 = vmatpush.bf16.msra.mxu2 %v692_v4  ;;  %807 = vmatpush.bf16.msra.mxu3 %v692_v4 }
  0x5e   : > { %346 = vmatpush.bf16.msra.mxu0 %v691_v5  ;;  %808 = vmatpush.bf16.msra.mxu1 %v691_v5 }
  0x5f   : > { %809 = vmatpush.bf16.msra.mxu2 %v691_v5  ;;  %810 = vmatpush.bf16.msra.mxu3 %v691_v5 }
  0x62   : > { %347 = vmatpush.bf16.msra.mxu0 %v690_v6  ;;  %811 = vmatpush.bf16.msra.mxu1 %v690_v6 }
  0x63   : > { %812 = vmatpush.bf16.msra.mxu2 %v690_v6  ;;  %813 = vmatpush.bf16.msra.mxu3 %v690_v6 }
  0x66   : > { %348 = vmatpush.bf16.msra.mxu0 %v689_v7  ;;  %814 = vmatpush.bf16.msra.mxu1 %v689_v7 }
  0x67   : > { %815 = vmatpush.bf16.msra.mxu2 %v689_v7  ;;  %816 = vmatpush.bf16.msra.mxu3 %v689_v7 }
  0x69   : > { %349 = vmatmul.bf16.vlgmr.msra.gmra.mxu0 %v257_v16  ;;  %369 = vmatmul.bf16.vlgmr.msra.gmra.mxu1 %v261_v17 }
  0x6a   : > { %389 = vmatmul.bf16.vlgmr.msra.gmra.mxu2 %v265_v18  ;;  %409 = vmatmul.bf16.vlgmr.msra.gmra.mxu3 %v269_v19 }
  0x79   : > { %354 = vmatmul.bf16.gmra.mxu0 %v258_v28  ;;  %374 = vmatmul.bf16.gmra.mxu1 %v262_v29 }
  0x7a   : > { %394 = vmatmul.bf16.gmra.mxu2 %v266_v30  ;;  %414 = vmatmul.bf16.gmra.mxu3 %v270_v31 }
  0x89   : > { %359 = vmatmul.bf16.gmra.mxu0 %v259_v40  ;;  %379 = vmatmul.bf16.gmra.mxu1 %v263_v41 }
  0x8a   : > { %399 = vmatmul.bf16.gmra.mxu2 %v267_v42  ;;  %419 = vmatmul.bf16.gmra.mxu3 %v271_v43 }
  0x99   : > { %364 = vmatmul.bf16.gmra.mxu0 %v260_v52  ;;  %384 = vmatmul.bf16.gmra.mxu1 %v264_v53 }
  0x9a   : > { %404 = vmatmul.bf16.gmra.mxu2 %v268_v54  ;;  %424 = vmatmul.bf16.gmra.mxu3 %v272_v55 }
  0xe6   : > { %v350_v56 = vpop.f32.mrf.mxu0  ;;  %v370_v57 = vpop.f32.mrf.mxu1 }
  0xe7   : > { %v351_v59 = vadd.f32 %v1228_v58, %v350_v56  ;;  %v371_v60 = vadd.f32 %v1228_v58, %v370_v57 }
  0xe9   : > { %v430_v3 = vmax.f32 %v351_v59, 0.0  ;;  %v438_v4 = vmax.f32 %v371_v60, 0.0 }
  0xed   : > { %v390_v61 = vpop.f32.mrf.mxu2  ;;  %v410_v62 = vpop.f32.mrf.mxu3 }
  0xee   : > { %v352_v63 = vpop.f32.mrf.mxu0  ;;  %v372_v0 = vpop.f32.mrf.mxu1  ;;  %v391_v9 = vadd.f32 %v1228_v58, %v390_v61  ;;  %v411_v10 = vadd.f32 %v1228_v58, %v410_v62 }
  0xef   : > { %v353_v1 = vadd.f32 %v1228_v58, %v352_v63  ;;  %v373_v2 = vadd.f32 %v1228_v58, %v372_v0 }
  0xf0   : > { %v446_v17 = vmax.f32 %v391_v9, 0.0  ;;  %v454_v18 = vmax.f32 %v411_v10, 0.0 }
  0xf1   : > { %v431_v5 = vmax.f32 %v353_v1, 0.0  ;;  %v439_v6 = vmax.f32 %v373_v2, 0.0 }
  0xf3   : > { %v701_v7 = vpack.c.bf16 %v431_v5, %v430_v3  ;;  %v721_v8 = vpack.c.bf16 %v439_v6, %v438_v4 }
  0xf5   : > { %702 = vst [vmem:[%s1237_s20] sm:$0xff] %v701_v7   ;;  %v392_v11 = vpop.f32.mrf.mxu2  ;;  %v412_v12 = vpop.f32.mrf.mxu3 }
  0xf6   : > { %781 = vst [vmem:[%s1237_s20 + $0x20] sm:$0xff] %v721_v8   ;;  %v393_v13 = vadd.f32 %v1228_v58, %v392_v11  ;;  %v413_v14 = vadd.f32 %v1228_v58, %v412_v12  ;;  %v355_v15 = vpop.f32.mrf.mxu0  ;;  %v375_v16 = vpop.f32.mrf.mxu1 }
  0xf7   : > { %v356_v23 = vadd.f32 %v1228_v58, %v355_v15  ;;  %v376_v24 = vadd.f32 %v1228_v58, %v375_v16 }
  0xf8   : > { %v447_v19 = vmax.f32 %v393_v13, 0.0  ;;  %v455_v20 = vmax.f32 %v413_v14, 0.0 }
  0xf9   : > { %v432_v31 = vmax.f32 %v356_v23, 0.0  ;;  %v440_v32 = vmax.f32 %v376_v24, 0.0 }
  0xfa   : > { %v741_v21 = vpack.c.bf16 %v447_v19, %v446_v17  ;;  %v761_v22 = vpack.c.bf16 %v455_v20, %v454_v18 }
  0xfc   : > { %785 = vst [vmem:[%s1237_s20 + $0x40] sm:$0xff] %v741_v21  }
  0xfd   : > { %789 = vst [vmem:[%s1237_s20 + $0x60] sm:$0xff] %v761_v22   ;;  %v395_v25 = vpop.f32.mrf.mxu2  ;;  %v415_v26 = vpop.f32.mrf.mxu3 }
  0xfe   : > { %v357_v27 = vpop.f32.mrf.mxu0  ;;  %v377_v28 = vpop.f32.mrf.mxu1  ;;  %v396_v37 = vadd.f32 %v1228_v58, %v395_v25  ;;  %v416_v38 = vadd.f32 %v1228_v58, %v415_v26 }
  0xff   : > { %v358_v29 = vadd.f32 %v1228_v58, %v357_v27  ;;  %v378_v30 = vadd.f32 %v1228_v58, %v377_v28 }
 0x100   : > { %v448_v45 = vmax.f32 %v396_v37, 0.0  ;;  %v456_v46 = vmax.f32 %v416_v38, 0.0 }
 0x101   : > { %v433_v33 = vmax.f32 %v358_v29, 0.0  ;;  %v441_v34 = vmax.f32 %v378_v30, 0.0 }
 0x103   : > { %v706_v35 = vpack.c.bf16 %v433_v33, %v432_v31  ;;  %v726_v36 = vpack.c.bf16 %v441_v34, %v440_v32 }
 0x105   : > { %778 = vst [vmem:[%s1237_s20 + $0x8] sm:$0xff] %v706_v35   ;;  %v397_v39 = vpop.f32.mrf.mxu2  ;;  %v417_v40 = vpop.f32.mrf.mxu3 }
 0x106   : > { %782 = vst [vmem:[%s1237_s20 + $0x28] sm:$0xff] %v726_v36   ;;  %v398_v41 = vadd.f32 %v1228_v58, %v397_v39  ;;  %v418_v42 = vadd.f32 %v1228_v58, %v417_v40  ;;  %v360_v43 = vpop.f32.mrf.mxu0  ;;  %v380_v44 = vpop.f32.mrf.mxu1 }
 0x107   : > { %v361_v51 = vadd.f32 %v1228_v58, %v360_v43  ;;  %v381_v52 = vadd.f32 %v1228_v58, %v380_v44 }
 0x108   : > { %v449_v47 = vmax.f32 %v398_v41, 0.0  ;;  %v457_v48 = vmax.f32 %v418_v42, 0.0 }
 0x109   : > { %v434_v60 = vmax.f32 %v361_v51, 0.0  ;;  %v442_v61 = vmax.f32 %v381_v52, 0.0 }
 0x10a   : > { %v746_v49 = vpack.c.bf16 %v449_v47, %v448_v45  ;;  %v766_v50 = vpack.c.bf16 %v457_v48, %v456_v46 }
 0x10c   : > { %786 = vst [vmem:[%s1237_s20 + $0x48] sm:$0xff] %v746_v49  }
 0x10d   : > { %790 = vst [vmem:[%s1237_s20 + $0x68] sm:$0xff] %v766_v50   ;;  %v400_v53 = vpop.f32.mrf.mxu2  ;;  %v420_v54 = vpop.f32.mrf.mxu3 }
 0x10e   : > { %v362_v55 = vpop.f32.mrf.mxu0  ;;  %v382_v56 = vpop.f32.mrf.mxu1  ;;  %v401_v2 = vadd.f32 %v1228_v58, %v400_v53  ;;  %v421_v3 = vadd.f32 %v1228_v58, %v420_v54 }
 0x10f   : > { %v363_v57 = vadd.f32 %v1228_v58, %v362_v55  ;;  %v383_v59 = vadd.f32 %v1228_v58, %v382_v56 }
 0x110   : > { %v450_v10 = vmax.f32 %v401_v2, 0.0  ;;  %v458_v11 = vmax.f32 %v421_v3, 0.0 }
 0x111   : > { %v435_v62 = vmax.f32 %v363_v57, 0.0  ;;  %v443_v63 = vmax.f32 %v383_v59, 0.0 }
 0x113   : > { %v711_v0 = vpack.c.bf16 %v435_v62, %v434_v60  ;;  %v731_v1 = vpack.c.bf16 %v443_v63, %v442_v61 }
 0x115   : > { %779 = vst [vmem:[%s1237_s20 + $0x10] sm:$0xff] %v711_v0   ;;  %v402_v4 = vpop.f32.mrf.mxu2  ;;  %v422_v5 = vpop.f32.mrf.mxu3 }
 0x116   : > { %783 = vst [vmem:[%s1237_s20 + $0x30] sm:$0xff] %v731_v1   ;;  %v403_v6 = vadd.f32 %v1228_v58, %v402_v4  ;;  %v423_v7 = vadd.f32 %v1228_v58, %v422_v5  ;;  %v365_v8 = vpop.f32.mrf.mxu0  ;;  %v385_v9 = vpop.f32.mrf.mxu1 }
 0x117   : > { %v366_v16 = vadd.f32 %v1228_v58, %v365_v8  ;;  %v386_v17 = vadd.f32 %v1228_v58, %v385_v9 }
 0x118   : > { %v451_v12 = vmax.f32 %v403_v6, 0.0  ;;  %v459_v13 = vmax.f32 %v423_v7, 0.0 }
 0x119   : > { %v436_v24 = vmax.f32 %v366_v16, 0.0  ;;  %v444_v25 = vmax.f32 %v386_v17, 0.0 }
 0x11a   : > { %v751_v14 = vpack.c.bf16 %v451_v12, %v450_v10  ;;  %v771_v15 = vpack.c.bf16 %v459_v13, %v458_v11 }
 0x11c   : > { %787 = vst [vmem:[%s1237_s20 + $0x50] sm:$0xff] %v751_v14  }
 0x11d   : > { %791 = vst [vmem:[%s1237_s20 + $0x70] sm:$0xff] %v771_v15   ;;  %v405_v18 = vpop.f32.mrf.mxu2  ;;  %v425_v19 = vpop.f32.mrf.mxu3 }
 0x11e   : > { %v367_v20 = vpop.f32.mrf.mxu0  ;;  %v387_v21 = vpop.f32.mrf.mxu1  ;;  %v406_v30 = vadd.f32 %v1228_v58, %v405_v18  ;;  %v426_v31 = vadd.f32 %v1228_v58, %v425_v19 }
 0x11f   : > { %v368_v22 = vadd.f32 %v1228_v58, %v367_v20  ;;  %v388_v23 = vadd.f32 %v1228_v58, %v387_v21 }
 0x120   : > { %v452_v36 = vmax.f32 %v406_v30, 0.0  ;;  %v460_v37 = vmax.f32 %v426_v31, 0.0 }
 0x121   : > { %v437_v26 = vmax.f32 %v368_v22, 0.0  ;;  %v445_v27 = vmax.f32 %v388_v23, 0.0 }
 0x123   : > { %v716_v28 = vpack.c.bf16 %v437_v26, %v436_v24  ;;  %v736_v29 = vpack.c.bf16 %v445_v27, %v444_v25 }
 0x125   : > { %780 = vst [vmem:[%s1237_s20 + $0x18] sm:$0xff] %v716_v28   ;;  %v407_v32 = vpop.f32.mrf.mxu2  ;;  %v427_v33 = vpop.f32.mrf.mxu3 }
 0x126   : > { %784 = vst [vmem:[%s1237_s20 + $0x38] sm:$0xff] %v736_v29   ;;  %v408_v34 = vadd.f32 %v1228_v58, %v407_v32  ;;  %v428_v35 = vadd.f32 %v1228_v58, %v427_v33 }
 0x128   : > { %v453_v38 = vmax.f32 %v408_v34, 0.0  ;;  %v461_v39 = vmax.f32 %v428_v35, 0.0 }
 0x129   : > { %533 = sbr.rel (!%p1107_p11) target bundleno = 333 (0x14d), region = 44 }
 0x12a   : > { %v756_v40 = vpack.c.bf16 %v453_v38, %v452_v36  ;;  %v776_v41 = vpack.c.bf16 %v461_v39, %v460_v37 }
 0x12c   : > { %788 = vst [vmem:[%s1237_s20 + $0x58] sm:$0xff] %v756_v40  }
 0x12d   : > { %792 = vst [vmem:[%s1237_s20 + $0x78] sm:$0xff] %v776_v41  }
 0x12e   : > { %s1368_s6 = smov (!%p536_p6, %s535_s6), 32 }
 0x12f   : > { %s681_s7 = sshll.u32 %s1368_s6, 2 }
 0x130   : > { %s539_s30 = ssub.s32 128, %s681_s7 }
 0x131   : > { %s540_s4 = sshll.u32 %s539_s30, 4 }
 0x132   : > { %541 = vsyncadd %s527_s22, %s540_s4  ;;  %p1290_p13 = scmp.ne.s32.totalorder %s681_s7, 0  ;;  %s697_s17 = sshll.u32 %s1076_s16, 7 }
 0x133   : > { %s544_s11 = scalar_lea.hbm %s1347_s3, %s697_s17  ;;  %s546_s27 = sshll.u32 %s1237_s20, 4  ;;  %s1299_s27 = int_to_ptr.vmem [resolvable:$true] %s546_s27 }
 0x134   : > { %s548_s28 = sshll.u32 %s544_s11, 4  ;;  %s685_s29 = sshll.u32 %s1368_s6, 6  ;;  %s1301_s28 = int_to_ptr.hbm [resolvable:$true] %s548_s28 }
 0x135   : > { %s943_s23 = sshra.s32 %s1299_s27, 4  ;;  %s945_s26 = sshrl.u32 %s685_s29, 4  ;;  %s944_s23 = int_to_ptr.vmem [resolvable:$true] %s943_s23 }
 0x136   : > { %s950_s10 = scalar_lea.vmem %s944_s23, %s945_s26  ;;  %s1032_s16 = smov [#allocation7]  }
 0x137   : > { %p951_p11 = scmp.ne.s32.totalorder %s944_s23, %s950_s10  ;;  %s954_s5 = scalar_lea.vmem %s1032_s16, 256 }
 0x138   : > { %p956_p9 = scmp.lt.s32.totalorder %s954_s5, %s950_s10 }
 0x139   : > { %p952_p2 = pnand %p951_p11, %p1290_p13 }
 0x13b   : > { %p953_p5 = pneg %p952_p2 }
 0x13d   : > { %p958_p10 = pnand %p956_p9, %p953_p5 }
 0x13f   : > { %961 = shalt.err (!%p958_p10)
}
 0x140   : > { %s962_s20 = sshra.s32 %s1301_s28, 4  ;;  %s973_s17 = scalar_lea.hbm %s1347_s3, 252  ;;  %s963_s20 = int_to_ptr.hbm [resolvable:$true] %s962_s20 }
 0x141   : > { %s969_s7 = scalar_lea.hbm %s963_s20, %s945_s26  ;;  %p974_p7 = scmp.lt.s32.totalorder %s963_s20, %s1347_s3 }
 0x142   : > { %p970_p1 = scmp.ne.s32.totalorder %s963_s20, %s969_s7  ;;  %p975_p8 = scmp.lt.s32.totalorder %s973_s17, %s969_s7 }
 0x144   : > { %p971_p0 = pnand %p970_p1, %p1290_p13  ;;  %p976_p4 = por %p975_p8, %p974_p7 }
 0x146   : > { %p972_p3 = pneg %p971_p0 }
 0x148   : > { %p977_p12 = pnand %p976_p4, %p972_p3 }
 0x14a   : > { %980 = shalt.err (!%p977_p12)
}
 0x14b   : > { %s1033_s11 = smov 64   ;;  %s1034_s23 = smov 4  }
 0x14c   : > { %554 = dma.vmem_to_hbm [thread:$0]  (%p1290_p13), %s1299_s27, %s685_s29, %s1301_s28, %s527_s22, %s1033_s11, %s1033_s11, %s1034_s23  }
 0x14d PF: > { %s563_s26 = sand.u32 1, %s1012_s12   ;;  %p1359_p6 = scmp.ne.s32.totalorder %s1353_s25, 0 }
 0x14e   : > { %p1360_p11 = scmp.ge.s32.totalorder %s1024_s15, 2  ;;  %s564_s10 = scalar_lea.sflag [#allocation4], %s563_s26 }
 0x150   : > { %p828_p2 = pnand %p1360_p11, %p1359_p6 }
 0x152   : > { %p829_p5 = pneg %p828_p2 }
 0x154   : > { %1007 = dma.done.wait (%p829_p5), %s564_s10, 2048  }
 0x155   : > { %1009 = vsyncadd (%p829_p5), %s564_s10, 4294965248  ;;  %p17_p9 = scmp.ge.s32.totalorder %s1080_s18, 4   ;;  %s1361_s12 = smov %s1016_s13 }
 0x156   : > { %s1362_s13 = smov %s1020_s14  ;;  %s1363_s14 = smov %s1092_s21 }
 0x157   : > { %s1364_s15 = smov %s1080_s18  ;;  %19 = sbr.rel (!%p17_p9) target bundleno = 6 (0x6), region = 81 }
 0x15c   :  { %570 = vsyncpa [#allocation3], 1 }
 0x15d   :  { %572 = vsyncpa [#allocation3 + $0x1], 1 }
 0x15e   :  { %573 = vsyncpa [#allocation6], 1 }
 0x15f   :  { %574 = vsyncpa [#allocation4], 1 }
 0x160   :  { %576 = vsyncpa [#allocation4 + $0x1], 1 }

</bundles_post_ra>
